<compile_context>
chip_gen: v6e
topology: v6e:2x2x1
jax: 0.10.0
libtpu: 0.0.40
codegen_flags: <defaults>
</compile_context>

<pallas_src>
import functools

import jax
import jax.numpy as jnp
from jax.experimental import pallas as pl
from jax.experimental.pallas import tpu as pltpu


def _round_up(a, b):
    return (a + b - 1) // b * b


def _make_smax_kernel(m_valid, tm, write_logits):
    """Kernel factory.  m_valid / tm / write_logits are static Python values."""

    def kernel(x_ref, w_ref, b_ref, *out_refs):
        if write_logits:
            logits_ref, logp_ref, met_ref = out_refs
        else:
            logp_ref, met_ref = out_refs

        # logits = x @ W^T + b   (bf16 inputs, f32 accumulation on the MXU)
        logits = jnp.dot(x_ref[...], w_ref[...],
                         preferred_element_type=jnp.float32)
        logits = logits + b_ref[...]

        # numerically-stable log_softmax along the vocab axis
        m = jnp.max(logits, axis=-1, keepdims=True)
        shifted = logits - m
        lse = jnp.log(jnp.sum(jnp.exp(shifted), axis=-1, keepdims=True))

        if write_logits:
            logits_ref[...] = logits.astype(logits_ref.dtype)
        logp_ref[...] = (shifted - lse).astype(logp_ref.dtype)

        # Fused metric partials (min / max / sum) over valid rows only.
        # Padded rows (from rounding M up to the row tile) are masked out.
        row = (pl.program_id(0) * tm
               + jax.lax.broadcasted_iota(jnp.int32, (tm, 1), 0))
        valid = row < m_valid
        met_ref[0, 0] = jnp.min(jnp.where(valid, logits, jnp.inf))
        met_ref[0, 1] = jnp.max(jnp.where(valid, logits, -jnp.inf))
        met_ref[0, 2] = jnp.sum(jnp.where(valid, logits, 0.0))

    return kernel


@functools.partial(jax.jit, static_argnames=("tm", "write_logits"))
def _smax_impl(x, weight, bias, *, tm=256, write_logits=True):
    """x: (nb, bs, H) f32, weight: (ntoken, H) f32, bias: (ntoken,) f32."""
    nb, bs, H = x.shape
    ntoken = weight.shape[0]
    M = nb * bs

    # Large row tile (amortizes per-step overhead, feeds the MXU), but never
    # larger than the (8-aligned) problem so tiny batches don't pad to 256.
    tm_eff = min(tm, _round_up(M, 8))
    M_pad = _round_up(M, tm_eff)
    num_tiles = M_pad // tm_eff

    x_flat = x.reshape(M, H).astype(jnp.bfloat16)
    if M_pad != M:
        x_flat = jnp.pad(x_flat, ((0, M_pad - M), (0, 0)))
    # bf16 weight halves the resident VMEM footprint and HBM->VMEM DMA; the
    # transpose fuses with the cast under jit (ideally callers pre-store W^T).
    w_t = weight.T.astype(jnp.bfloat16)              # (H, ntoken)
    bias2d = bias.reshape(1, ntoken).astype(jnp.float32)

    kernel = _make_smax_kernel(M, tm_eff, write_logits)

    out_shape = []
    out_specs = []
    if write_logits:
        out_shape.append(jax.ShapeDtypeStruct((M_pad, ntoken), jnp.float32))
        out_specs.append(pl.BlockSpec((tm_eff, ntoken), lambda i: (i, 0)))
    out_shape.append(jax.ShapeDtypeStruct((M_pad, ntoken), jnp.float32))
    out_specs.append(pl.BlockSpec((tm_eff, ntoken), lambda i: (i, 0)))
    # tiny per-tile metric partials live in SMEM (no (8,128) constraint)
    out_shape.append(jax.ShapeDtypeStruct((num_tiles, 3), jnp.float32))
    out_specs.append(pl.BlockSpec((1, 3), lambda i: (i, 0),
                                  memory_space=pltpu.MemorySpace.SMEM))

    n_out = 2 if write_logits else 1
    cost = pl.CostEstimate(
        flops=2 * M_pad * H * ntoken,
        transcendentals=M_pad * ntoken,          # exp (+log) per element
        bytes_accessed=(M_pad * H * 2 + H * ntoken * 2 + ntoken * 4
                        + n_out * M_pad * ntoken * 4 + num_tiles * 3 * 4),
    )

    outs = pl.pallas_call(
        kernel,
        out_shape=tuple(out_shape),
        grid_spec=pltpu.PrefetchScalarGridSpec(
            num_scalar_prefetch=0,
            grid=(num_tiles,),
            in_specs=[
                pl.BlockSpec((tm_eff, H), lambda i: (i, 0)),      # x row tile
                pl.BlockSpec((H, ntoken), lambda i: (0, 0)),      # resident W^T
                pl.BlockSpec((1, ntoken), lambda i: (0, 0)),      # bias row
            ],
            out_specs=out_specs,
        ),
        compiler_params=pltpu.CompilerParams(
            dimension_semantics=("parallel",),
            vmem_limit_bytes=48 * 1024 * 1024,   # safe on v5e/v6e/v7x
        ),
        cost_estimate=cost,
    )(x_flat, w_t, bias2d)

    if write_logits:
        logits_p, logp_p, met = outs
        logits_flat = logits_p[:M]
    else:
        logp_p, met = outs
        logits_flat = None
    logp_flat = logp_p[:M]

    met_min = jnp.min(met[:, 0])
    met_max = jnp.max(met[:, 1])
    met_mean = jnp.sum(met[:, 2]) / (M * ntoken)
    return logits_flat, logp_flat, (met_min, met_max, met_mean)


def smax_forward(params, inp, extras):
    """Mirror of Smax.forward.  inp: (num_batches, batch_size, nhidlast)."""
    calc_metrics = bool(extras["return_top_metrics"])
    return_f_logits = bool(extras["return_f_logits"])

    logits_flat, logp_flat, (mn, mx, mean) = _smax_impl(
        inp, params["weight"], params["bias"],
        tm=256, write_logits=return_f_logits)

    result = {"top_metrics": {}}
    metrics = {}
    if calc_metrics:
        # host pulls only happen when metrics are requested (matches .item())
        metrics["min"] = float(mn)
        metrics["max"] = float(mx)
        metrics["mean"] = float(mean)
    result["top_metrics"]["logits"] = metrics

    # self.func(logits) returns None -> func_logits = logits
    result["output"] = logp_flat                       # (-1, ntoken)
    if return_f_logits:
        result["f_logits"] = logits_flat               # (-1, ntoken)
    return result


if __name__ == "__main__":
    # Module hyperparameters (small, consistent with the forward pass)
    ntoken = 128
    nhidlast = 32
    num_batches = 2
    batch_size = 8

    key = jax.random.PRNGKey(0)
    k_x, k_w = jax.random.split(key)

    # Deterministic init matching Smax.init_weights: W ~ U(-0.1, 0.1), b = 0
    params = {
        "weight": jax.random.uniform(
            k_w, (ntoken, nhidlast), jnp.float32, minval=-0.1, maxval=0.1),
        "bias": jnp.zeros((ntoken,), jnp.float32),
    }

    x = jax.random.normal(k_x, (num_batches, batch_size, nhidlast), jnp.float32)
    extras = {"return_top_metrics": True, "return_f_logits": True}

    result = smax_forward(params, x, extras)
    jax.block_until_ready(result["output"])
    jax.block_until_ready(result["f_logits"])

    # Reference: kernel uses bf16 inputs with f32 accumulation, so compare
    # against a bf16-rounded-input f32 reference.
    w_r = params["weight"].astype(jnp.bfloat16).astype(jnp.float32)

    def ref(xin):
        xr = xin.reshape(-1, nhidlast).astype(jnp.bfloat16).astype(jnp.float32)
        lg = xr @ w_r.T + params["bias"]
        return lg, jax.nn.log_softmax(lg, axis=-1)

    logits_ref, logp_ref = ref(x)
    assert jnp.allclose(result["f_logits"], logits_ref, atol=1e-3), "logits mismatch"
    assert jnp.allclose(result["output"], logp_ref, atol=1e-3), "log_softmax mismatch"

    m = result["top_metrics"]["logits"]
    assert abs(m["min"] - float(jnp.min(logits_ref))) < 1e-3
    assert abs(m["max"] - float(jnp.max(logits_ref))) < 1e-3
    assert abs(m["mean"] - float(jnp.mean(logits_ref))) < 1e-3

    # Exercise the logp-only variant (no logits write) and the padded/masked
    # path (M = 21 rows -> row tile 24 with 3 masked pad rows).
    res2 = smax_forward(params, x,
                        {"return_top_metrics": False, "return_f_logits": False})
    jax.block_until_ready(res2["output"])
    assert jnp.allclose(res2["output"], logp_ref, atol=1e-3)

    x2 = jax.random.normal(jax.random.PRNGKey(1), (3, 7, nhidlast), jnp.float32)
    res3 = smax_forward(params, x2, extras)
    jax.block_until_ready(res3["output"])
    logits_ref2, logp_ref2 = ref(x2)
    assert jnp.allclose(res3["f_logits"], logits_ref2, atol=1e-3)
    assert jnp.allclose(res3["output"], logp_ref2, atol=1e-3)
    m2 = res3["top_metrics"]["logits"]
    assert abs(m2["min"] - float(jnp.min(logits_ref2))) < 1e-3
    assert abs(m2["max"] - float(jnp.max(logits_ref2))) < 1e-3
    assert abs(m2["mean"] - float(jnp.mean(logits_ref2))) < 1e-3

    print("KERNEL_OK")
</pallas_src>

<mosaic_0001>
module attributes {stable_mosaic.version = 11 : i64} {
  func.func @kernel(%arg0: i32, %arg1: memref<16x32xbf16, #tpu.memory_space<vmem>>, %arg2: memref<32x128xbf16, #tpu.memory_space<vmem>>, %arg3: memref<1x128xf32, #tpu.memory_space<vmem>>, %arg4: memref<16x128xf32, #tpu.memory_space<vmem>>, %arg5: memref<16x128xf32, #tpu.memory_space<vmem>>, %arg6: memref<1x3xf32, #tpu.memory_space<smem>>) attributes {dimension_semantics = [#tpu.dimension_semantics<parallel>], iteration_bounds = array<i64: 1>, scalar_prefetch = 0 : i64, scratch_operands = 0 : i64, tpu.core_type = #tpu.core_type<tc>, window_params = [{transform_indices = @transform_0, window_bounds = array<i64: 16, 32>}, {pipeline_mode = #tpu.pipeline_mode<synchronous>, transform_indices = @transform_1, window_bounds = array<i64: 32, 128>}, {pipeline_mode = #tpu.pipeline_mode<synchronous>, transform_indices = @transform_2, window_bounds = array<i64: 1, 128>}, {transform_indices = @transform_3, window_bounds = array<i64: 16, 128>}, {transform_indices = @transform_4, window_bounds = array<i64: 16, 128>}, {transform_indices = @transform_5, window_bounds = array<i64: 1, 3>}]} {
    %c0 = arith.constant 0 : index
    %c0_0 = arith.constant 0 : index
    %0 = vector.load %arg1[%c0, %c0_0] : memref<16x32xbf16, #tpu.memory_space<vmem>>, vector<16x32xbf16>
    %c0_1 = arith.constant 0 : index
    %c0_2 = arith.constant 0 : index
    %1 = vector.load %arg2[%c0_1, %c0_2] : memref<32x128xbf16, #tpu.memory_space<vmem>>, vector<32x128xbf16>
    %cst = arith.constant dense<0.000000e+00> : vector<16x128xf32>
    %2 = tpu.matmul %0, %1, %cst {dimension_numbers = #tpu.dot_dimension_numbers<[1], [0], [0], [1], [0, 0, 1, 1], [], []>} : vector<16x32xbf16>, vector<32x128xbf16>, vector<16x128xf32> -> vector<16x128xf32>
    %c0_3 = arith.constant 0 : index
    %c0_4 = arith.constant 0 : index
    %3 = vector.load %arg3[%c0_3, %c0_4] : memref<1x128xf32, #tpu.memory_space<vmem>>, vector<1x128xf32>
    %4 = vector.broadcast %3 : vector<1x128xf32> to vector<16x128xf32>
    %5 = arith.addf %2, %4 : vector<16x128xf32>
    %cst_5 = arith.constant dense<0xFF800000> : vector<16xf32>
    %6 = vector.multi_reduction <maximumf>, %5, %cst_5 [1] : vector<16x128xf32> to vector<16xf32>
    %7 = vector.shape_cast %6 : vector<16xf32> to vector<16x1xf32>
    %8 = vector.broadcast %7 : vector<16x1xf32> to vector<16x128xf32>
    %9 = arith.subf %5, %8 : vector<16x128xf32>
    %10 = math.exp %9 : vector<16x128xf32>
    %cst_6 = arith.constant dense<0.000000e+00> : vector<16xf32>
    %11 = vector.multi_reduction <add>, %10, %cst_6 [1] : vector<16x128xf32> to vector<16xf32>
    %12 = vector.shape_cast %11 : vector<16xf32> to vector<16x1xf32>
    %13 = math.log %12 : vector<16x1xf32>
    %c0_7 = arith.constant 0 : index
    %c0_8 = arith.constant 0 : index
    %14 = vector.load %arg4[%c0_7, %c0_8] : memref<16x128xf32, #tpu.memory_space<vmem>>, vector<16x128xf32>
    tpu.vector_store %arg4[%c0_7, %c0_8], %5 {strides = array<i32>} : memref<16x128xf32, #tpu.memory_space<vmem>>, vector<16x128xf32>,
    %15 = vector.broadcast %13 : vector<16x1xf32> to vector<16x128xf32>
    %16 = arith.subf %9, %15 : vector<16x128xf32>
    %c0_9 = arith.constant 0 : index
    %c0_10 = arith.constant 0 : index
    %17 = vector.load %arg5[%c0_9, %c0_10] : memref<16x128xf32, #tpu.memory_space<vmem>>, vector<16x128xf32>
    tpu.vector_store %arg5[%c0_9, %c0_10], %16 {strides = array<i32>} : memref<16x128xf32, #tpu.memory_space<vmem>>, vector<16x128xf32>,
    %c16_i32 = arith.constant 16 : i32
    %18 = arith.muli %arg0, %c16_i32 : i32
    %19 = tpu.iota {dimensions = array<i32: 0>} : vector<16x1xi32>
    %20 = vector.broadcast %18 : i32 to vector<16x1xi32>
    %21 = arith.addi %20, %19 : vector<16x1xi32>
    %c16_i32_11 = arith.constant 16 : i32
    %22 = vector.broadcast %c16_i32_11 : i32 to vector<16x1xi32>
    %23 = arith.cmpi slt, %21, %22 : vector<16x1xi32>
    %cst_12 = arith.constant 0x7F800000 : f32
    %24 = vector.shape_cast %23 : vector<16x1xi1> to vector<16x1xi1>
    %25 = vector.broadcast %24 : vector<16x1xi1> to vector<16x128xi1>
    %26 = vector.broadcast %cst_12 : f32 to vector<16x128xf32>
    %27 = arith.select %25, %5, %26 : vector<16x128xi1>, vector<16x128xf32>
    %28 = vector.shape_cast %27 : vector<16x128xf32> to vector<1x16x128xf32>
    %cst_13 = arith.constant dense<0x7F800000> : vector<1xf32>
    %29 = vector.multi_reduction <minimumf>, %28, %cst_13 [1, 2] : vector<1x16x128xf32> to vector<1xf32>
    %30 = vector.shape_cast %29 : vector<1xf32> to vector<1x1x1xf32>
    %31 = vector.extract %30[0, 0, 0] : f32 from vector<1x1x1xf32>
    %c0_14 = arith.constant 0 : index
    %c0_15 = arith.constant 0 : index
    %32 = memref.load %arg6[%c0_14, %c0_15] : memref<1x3xf32, #tpu.memory_space<smem>>
    memref.store %31, %arg6[%c0_14, %c0_15] : memref<1x3xf32, #tpu.memory_space<smem>>
    %cst_16 = arith.constant 0xFF800000 : f32
    %33 = vector.shape_cast %23 : vector<16x1xi1> to vector<16x1xi1>
    %34 = vector.broadcast %33 : vector<16x1xi1> to vector<16x128xi1>
    %35 = vector.broadcast %cst_16 : f32 to vector<16x128xf32>
    %36 = arith.select %34, %5, %35 : vector<16x128xi1>, vector<16x128xf32>
    %37 = vector.shape_cast %36 : vector<16x128xf32> to vector<1x16x128xf32>
    %cst_17 = arith.constant dense<0xFF800000> : vector<1xf32>
    %38 = vector.multi_reduction <maximumf>, %37, %cst_17 [1, 2] : vector<1x16x128xf32> to vector<1xf32>
    %39 = vector.shape_cast %38 : vector<1xf32> to vector<1x1x1xf32>
    %40 = vector.extract %39[0, 0, 0] : f32 from vector<1x1x1xf32>
    %c0_18 = arith.constant 0 : index
    %c1 = arith.constant 1 : index
    %41 = memref.load %arg6[%c0_18, %c1] : memref<1x3xf32, #tpu.memory_space<smem>>
    memref.store %40, %arg6[%c0_18, %c1] : memref<1x3xf32, #tpu.memory_space<smem>>
    %cst_19 = arith.constant 0.000000e+00 : f32
    %42 = vector.shape_cast %23 : vector<16x1xi1> to vector<16x1xi1>
    %43 = vector.broadcast %42 : vector<16x1xi1> to vector<16x128xi1>
    %44 = vector.broadcast %cst_19 : f32 to vector<16x128xf32>
    %45 = arith.select %43, %5, %44 : vector<16x128xi1>, vector<16x128xf32>
    %46 = vector.shape_cast %45 : vector<16x128xf32> to vector<1x16x128xf32>
    %cst_20 = arith.constant dense<0.000000e+00> : vector<1xf32>
    %47 = vector.multi_reduction <add>, %46, %cst_20 [1, 2] : vector<1x16x128xf32> to vector<1xf32>
    %48 = vector.shape_cast %47 : vector<1xf32> to vector<1x1x1xf32>
    %49 = vector.extract %48[0, 0, 0] : f32 from vector<1x1x1xf32>
    %c0_21 = arith.constant 0 : index
    %c2 = arith.constant 2 : index
    %50 = memref.load %arg6[%c0_21, %c2] : memref<1x3xf32, #tpu.memory_space<smem>>
    memref.store %49, %arg6[%c0_21, %c2] : memref<1x3xf32, #tpu.memory_space<smem>>
    return
  }
  func.func @transform_0(%arg0: i32) -> (i32, i32) {
    %c0_i32 = arith.constant 0 : i32
    %c0_i32_0 = arith.constant 0 : i32
    return %arg0, %c0_i32 : i32, i32
  }
  func.func @transform_1(%arg0: i32) -> (i32, i32) {
    %c0_i32 = arith.constant 0 : i32
    %c0_i32_0 = arith.constant 0 : i32
    %c0_i32_1 = arith.constant 0 : i32
    return %c0_i32, %c0_i32_0 : i32, i32
  }
  func.func @transform_2(%arg0: i32) -> (i32, i32) {
    %c0_i32 = arith.constant 0 : i32
    %c0_i32_0 = arith.constant 0 : i32
    %c0_i32_1 = arith.constant 0 : i32
    return %c0_i32, %c0_i32_0 : i32, i32
  }
  func.func @transform_3(%arg0: i32) -> (i32, i32) {
    %c0_i32 = arith.constant 0 : i32
    %c0_i32_0 = arith.constant 0 : i32
    return %arg0, %c0_i32 : i32, i32
  }
  func.func @transform_4(%arg0: i32) -> (i32, i32) {
    %c0_i32 = arith.constant 0 : i32
    %c0_i32_0 = arith.constant 0 : i32
    return %arg0, %c0_i32 : i32, i32
  }
  func.func @transform_5(%arg0: i32) -> (i32, i32) {
    %c0_i32 = arith.constant 0 : i32
    %c0_i32_0 = arith.constant 0 : i32
    return %arg0, %c0_i32 : i32, i32
  }
}

</mosaic_0001>

<bundles_post_ra>
// kernel: _smax_impl.1
= control target key start
LH: loop header
LB: loop body
LE: loop exit
PB: predicated region body
PF: predicated region fallthrough
CT: control target
= control target key end

     0   :  { %11 = vsyncpa [#allocation3], 0  ;;  %s392_s0 = inlined_call_operand.vmem [shape: bf16[16,32], index: 0, kind: input, shape index: {}]   ;;  %s393_s1 = inlined_call_operand.vmem [shape: bf16[32,128], index: 1, kind: input, shape index: {}]   ;;  %s394_s2 = inlined_call_operand.vmem [shape: f32[1,128], index: 2, kind: input, shape index: {}]   ;;  %s395_s3 = inlined_call_operand.hbm [shape: f32[16,128], index: 3, kind: output, shape index: {0}]   ;;  %s396_s4 = inlined_call_operand.hbm [shape: f32[16,128], index: 4, kind: output, shape index: {1}]   ;;  %s397_s5 = inlined_call_operand.vmem [shape: f32[1,3], index: 5, kind: output, shape index: {2}]  }
   0x1   :  { %12 = vsyncpa [#allocation6], 0  ;;  %v251_v0 = vld [vmem:[%s393_s1 + $0x8] sm:$0xff]   ;;  %v320_v1 = vmov 0.0   ;;  %v252_v2 = vld [vmem:[%s393_s1] sm:$0xff]   ;;  %vm321_vm0 = vmmov 0  }
   0x2   :  { %230 = vmatprep.subr.bf16.mxu0 %v320_v1  ;;  %234 = vmatprep.mubr.msk.bf16.mxu0 %vm321_vm0, %v320_v1 }
   0x3   :  { %231 = vmatpush3.bf16.msra.mxu0 %v251_v0 }
   0x4   :  { %232 = vmatprep.subr.bf16.mxu0 %v320_v1 }
   0x5   :  { %13 = vsyncpa [#allocation4], 0  ;;  %v253_v3 = vld [vmem:[%s392_s0] sm:$0xff]   ;;  %vm51_vm1 = vcmask 261120   ;;  %s322_s0 = smov [#allocation2]  }
   0x6   :  { %v222_v4 = vld [vmem:[%s394_s2] ss:$0 sm:$0xff]  ;;  %s180_s1 = sshll.u32 %s322_s0, 4  ;;  %s181_s1 = int_to_ptr.vmem [resolvable:$true] %s180_s1 }
   0x7   :  { %233 = vmatpush3.bf16.msra.mxu0 %v252_v2  ;;  %s262_s2 = scalar_lea.vmem %s181_s1, 256  ;;  %p267_p1 = scmp.lt.s32.totalorder %s181_s1, %s181_s1 }
   0x8   :  { %p263_p0 = scmp.ne.s32.totalorder %s181_s1, %s262_s2  ;;  %p268_p2 = scmp.lt.s32.totalorder %s262_s2, %s262_s2 }
   0xa   :  { %235 = vmatmul.mubr.msk.bf16.vlgmr.msra.gmra.mxu0 %vm51_vm1, %v253_v3  ;;  %p269_p3 = por %p268_p2, %p267_p1 }
   0xc   :  { %p270_p4 = pnand %p269_p3, %p263_p0 }
  0xca   :  { %v89_v5 = vpop.f32.mrf.mxu0 }
  0xcb   :  { %v90_v6 = vadd.f32 %v222_v4, %v89_v5 }
  0xcc   :  { %v236_v7 = vpop.f32.mrf.mxu0 }
  0xcd   :  { %114 = vst [vmem:[#allocation2] sm:$0xff] %v90_v6  ;;  %96 = vmax.xlane.f32.xlu0 %v90_v6 }
  0xce   :  { %v92_v8 = vpop.f32.mrf.mxu0 }
  0xcf   :  { %v93_v9 = vadd.f32 %v222_v4, %v92_v8 }
  0xd0   :  { %v237_v10 = vpop.f32.mrf.mxu0 }
  0xd1   :  { %115 = vst [vmem:[#allocation2 + $0x8] sm:$0xff] %v93_v9  ;;  %98 = vmax.xlane.f32.xlu0 %v93_v9  ;;  %v135_v11 = vmin.f32 %v90_v6, %v93_v9  ;;  %v163_v12 = vadd.f32 %v93_v9, %v90_v6  ;;  %v149_v13 = vmax.f32 %v90_v6, %v93_v9 }
  0xd3   :  { %136 = vmin.xlane.f32.xlu1 %v135_v11 }
  0xd5   :  { %164 = vadd.xlane.f32.xlu0 %v163_v12 }
  0xd7   :  { %150 = vmax.xlane.f32.xlu1 %v149_v13 }
 0x156   :  { %v97_v14 = vpop.xlane.xlu0 %96 }
 0x157   :  { %v369_v15 = vsub.f32 %v90_v6, %v97_v14 }
 0x159   :  { %v102_v16 = vmul.f32 1.442695, %v369_v15 }
 0x15a   :  { %v99_v17 = vpop.xlane.xlu0 %98 }
 0x15b   :  { %254 = vpow2.f32 %v102_v16  ;;  %v372_v18 = vsub.f32 %v93_v9, %v99_v17 }
 0x15c   :  { %v137_v19 = vpop.xlane.xlu1 %136 }
 0x15d   :  { %v104_v20 = vmul.f32 1.442695, %v372_v18  ;;  %v138_v21 = vrot.slane %v137_v19, 4 }
 0x15e   :  { %v165_v22 = vpop.xlane.xlu0 %164 }
 0x15f   :  { %256 = vpow2.f32 %v104_v20  ;;  %v139_v23 = vmin.f32 %v137_v19, %v138_v21  ;;  %v166_v24 = vrot.slane %v165_v22, 4 }
 0x160   :  { %v151_v25 = vpop.xlane.xlu1 %150 }
 0x161   :  { %v140_v26 = vrot.slane %v139_v23, 2  ;;  %v167_v27 = vadd.f32 %v166_v24, %v165_v22  ;;  %v152_v28 = vrot.slane %v151_v25, 4 }
 0x163   :  { %v168_v29 = vrot.slane %v167_v27, 2  ;;  %v153_v30 = vmax.f32 %v151_v25, %v152_v28  ;;  %v141_v31 = vmin.f32 %v139_v23, %v140_v26 }
 0x165   :  { %v154_v32 = vrot.slane %v153_v30, 2  ;;  %v142_v33 = vrot.slane %v141_v31, 1  ;;  %v169_v34 = vadd.f32 %v168_v29, %v167_v27 }
 0x167   :  { %v143_v35 = vmin.f32 %v141_v31, %v142_v33  ;;  %v155_v36 = vmax.f32 %v153_v30, %v154_v32  ;;  %v170_v38 = vrot.slane %v169_v34, 1 }
 0x168   :  { %v255_v37 = vpop.eup %254 }
 0x169   :  { %106 = vadd.xlane.f32.xlu1 %v255_v37  ;;  %238 = vpush %v143_v35  ;;  %v156_v39 = vrot.slane %v155_v36, 1  ;;  %v171_v42 = vadd.f32 %v170_v38, %v169_v34 }
 0x16b   :  { %v157_v40 = vmax.f32 %v155_v36, %v156_v39 }
 0x16c   :  { %v257_v41 = vpop.eup %256 }
 0x16d   :  { %108 = vadd.xlane.f32.xlu0 %v257_v41  ;;  %240 = vpush %v157_v40 }
 0x16e   :  { %242 = vpush %v171_v42 }
 0x16f   :  { %273 = shalt.err (!%p270_p4)
}
 0x170   :  { %s323_s26 = smov 128   ;;  %s324_s27 = smov 8  }
 0x171   :  { %186 = dma.vmem_to_hbm [thread:$0]  %s181_s1, 256, %s395_s3, [#allocation3], %s323_s26, %s323_s26, %s324_s27  }
 0x172   :  { %s205_s8 = sshll.u32 %s397_s5, 4  ;;  %s206_s8 = int_to_ptr.vmem [resolvable:$true] %s205_s8 }
 0x173   :  { %s282_s11 = scalar_lea.vmem %s206_s8, 16  ;;  %p287_p6 = scmp.lt.s32.totalorder %s206_s8, %s206_s8 }
 0x174   :  { %p283_p5 = scmp.ne.s32.totalorder %s206_s8, %s282_s11  ;;  %p288_p7 = scmp.lt.s32.totalorder %s282_s11, %s282_s11 }
 0x176   :  { %p289_p8 = por %p288_p7, %p287_p6 }
 0x178   :  { %p290_p9 = pnand %p289_p8, %p283_p5 }
 0x19a   :  { %s239_s30 = spop %238 }
 0x19b   :  { %146 = sst [smem:[#allocation7]] %s239_s30 }
 0x19e   :  { %s241_s9 = spop %240 }
 0x19f   :  { %160 = sst [smem:[#allocation7 + $0x1]] %s241_s9  ;;  %s243_s10 = spop %242 }
 0x1a0   :  { %174 = sst [smem:[#allocation7 + $0x2]] %s243_s10 }
 0x1a1   :  { %293 = shalt.err (!%p290_p9)
}
 0x1a2   :  { %s325_s12 = smov [#allocation7]   ;;  %s326_s3 = smov [#allocation5]  }
 0x1a3   :  { %208 = dma.smem_to_vmem %s325_s12, 16, %s206_s8, [#allocation4]  }
 0x1a4   :  { %s192_s5 = sshll.u32 %s326_s3, 4  ;;  %s193_s5 = int_to_ptr.vmem [resolvable:$true] %s192_s5 }
 0x1a5   :  { %s294_s13 = scalar_lea.vmem %s193_s5, 256  ;;  %p299_p11 = scmp.lt.s32.totalorder %s193_s5, %s193_s5 }
 0x1a6   :  { %p295_p10 = scmp.ne.s32.totalorder %s193_s5, %s294_s13  ;;  %p300_p12 = scmp.lt.s32.totalorder %s294_s13, %s294_s13 }
 0x1a8   :  { %p301_p13 = por %p300_p12, %p299_p11 }
 0x1aa   :  { %p302_p0 = pnand %p301_p13, %p295_p10 }
 0x1f2   :  { %v107_v43 = vpop.xlane.xlu1 %106 }
 0x1f3   :  { %258 = vlog2.f32 %v107_v43 }
 0x1f6   :  { %v109_v44 = vpop.xlane.xlu0 %108 }
 0x1f7   :  { %260 = vlog2.f32 %v109_v44 }
 0x200   :  { %v259_v45 = vpop.eup %258 }
 0x201   :  { %v111_v46 = vmul.f32 0.6931472, %v259_v45 }
 0x203   :  { %v116_v47 = vsub.f32 %v369_v15, %v111_v46 }
 0x204   :  { %v261_v48 = vpop.eup %260 }
 0x205   :  { %118 = vst [vmem:[#allocation5] sm:$0xff] %v116_v47  ;;  %v113_v49 = vmul.f32 0.6931472, %v261_v48 }
 0x207   :  { %v117_v50 = vsub.f32 %v372_v18, %v113_v49 }
 0x209   :  { %119 = vst [vmem:[#allocation5 + $0x8] sm:$0xff] %v117_v50 }
 0x20a   :  { %305 = shalt.err (!%p302_p0)
}
 0x20b   :  { %198 = dma.vmem_to_hbm [thread:$0]  %s193_s5, 256, %s396_s4, [#allocation6], %s323_s26, %s323_s26, %s324_s27  }
 0x20c   :  { %314 = dma.done.wait [#allocation3], 256  }
 0x20d   :  { %315 = vsyncadd [#allocation3], 4294967040 }
 0x20e   :  { %316 = dma.done.wait [#allocation6], 256  }
 0x20f   :  { %317 = vsyncadd [#allocation6], 4294967040 }
 0x210   :  { %318 = dma.done.wait [#allocation4], 16  }
 0x211   :  { %319 = vsyncadd [#allocation4], 4294967280 }
 0x212   :  { %218 = sfence }
 0x213   :  { %219 = vsyncpa [#allocation3], 1 }
 0x214   :  { %220 = vsyncpa [#allocation6], 1 }
 0x215   :  { %221 = vsyncpa [#allocation4], 1 }

</bundles_post_ra>
